<compile_context>
chip_gen: v5e
topology: v5e:2x2
jax: 0.10.0
libtpu: 0.0.40
codegen_flags: <defaults>
</compile_context>

<pallas_src>
import math

import jax
import jax.numpy as jnp
from jax import lax
from jax.experimental import pallas as pl
from jax.experimental.pallas import tpu as pltpu

INPUT_DIM = 32
HIDDEN1 = 64
HIDDEN2 = 32
BATCH = 8
BN_EPS = 1e-5
PACK_LANES = 128  # lane width of the packed bias/head operand

assert HIDDEN1 <= PACK_LANES and HIDDEN2 <= PACK_LANES


def _gelu_exact(x):
    # nn.GELU default (approximate='none'): 0.5 * x * (1 + erf(x / sqrt(2)))
    # NOTE: erf is a VPU polynomial; if parity tolerance can be relaxed, the
    # tanh-approx GELU runs on the (otherwise idle) EUP slot instead.
    return 0.5 * x * (1.0 + lax.erf(x * (1.0 / math.sqrt(2.0))))


# ---------------------------------------------------------------------------
# Kernel
# ---------------------------------------------------------------------------
def mlp_kernel(x_ref, w1_ref, w2_ref, pk_ref, o_ref):
    x = x_ref[...]                          # (tile_b, INPUT_DIM) f32

    # Packed (4, 128) operand: row0 = folded b1, row1 = folded b2,
    # row2 = head weight w3^T, row3[0] = head bias b3.
    b1 = pk_ref[0:1, 0:HIDDEN1]             # (1, H1)
    b2 = pk_ref[1:2, 0:HIDDEN2]             # (1, H2)
    w3t = pk_ref[2:3, 0:HIDDEN2]            # (1, H2)
    b3 = pk_ref[3:4, 0:1]                   # (1, 1)

    # Layer 1: Linear (eval-BN folded) -> GELU -> Dropout(identity, eval)
    h = jnp.dot(x, w1_ref[...], preferred_element_type=jnp.float32) + b1
    h = _gelu_exact(h)
    # Layer 2: Linear (eval-BN folded) -> GELU -> Dropout(identity, eval)
    h = jnp.dot(h, w2_ref[...], preferred_element_type=jnp.float32) + b2
    h = _gelu_exact(h)
    # Head, transposed: (1, H2) contracted with (tile_b, H2) -> (1, tile_b).
    # Result is lane-dense along the batch axis -> tiny, unmasked writeback.
    o = lax.dot_general(w3t, h, (((1,), (1,)), ((), ())),
                        preferred_element_type=jnp.float32) + b3
    o_ref[...] = o.astype(o_ref.dtype)


# ---------------------------------------------------------------------------
# Parameter preparation (PyTorch-style init + BN fold + packing)
# ---------------------------------------------------------------------------
def init_params(key):
    """PyTorch-style params: Linear weights stored as (in, out); BN stats."""
    k1, k2, k3 = jax.random.split(key, 3)

    def linear(k, fan_in, fan_out):
        kw, kb = jax.random.split(k)
        bound = 1.0 / math.sqrt(fan_in)
        w = jax.random.uniform(kw, (fan_in, fan_out), jnp.float32, -bound, bound)
        b = jax.random.uniform(kb, (fan_out,), jnp.float32, -bound, bound)
        return w, b

    w1, b1 = linear(k1, INPUT_DIM, HIDDEN1)
    w2, b2 = linear(k2, HIDDEN1, HIDDEN2)
    w3, b3 = linear(k3, HIDDEN2, 1)

    def bn(dim):
        gamma = jnp.ones((dim,), jnp.float32)
        beta = jnp.zeros((dim,), jnp.float32)
        running_mean = jnp.zeros((dim,), jnp.float32)
        running_var = jnp.ones((dim,), jnp.float32)
        return gamma, beta, running_mean, running_var

    return (w1, b1, bn(HIDDEN1), w2, b2, bn(HIDDEN2), w3, b3)


def pack_params(params):
    """Fold eval-mode BatchNorm into the Linears; pack biases + head into one operand."""
    (w1, b1, bn1, w2, b2, bn2, w3, b3) = params

    def fold(w, b, bn_p):
        gamma, beta, mean, var = bn_p
        scale = gamma / jnp.sqrt(var + BN_EPS)
        return w * scale[None, :], (b - mean) * scale + beta

    w1f, b1f = fold(w1, b1, bn1)
    w2f, b2f = fold(w2, b2, bn2)

    # Single (4, 128) operand -> one DMA, stays VMEM-resident across batch tiles.
    packed = jnp.zeros((4, PACK_LANES), jnp.float32)
    packed = packed.at[0, :HIDDEN1].set(b1f)
    packed = packed.at[1, :HIDDEN2].set(b2f)
    packed = packed.at[2, :HIDDEN2].set(w3[:, 0])   # head weight, transposed
    packed = packed.at[3, 0].set(b3[0])             # head bias

    # NOTE: an optional bf16 cast of x/w1f/w2f (keep f32 accumulation + f32
    # GELU) halves streamed activation bytes on v5e/v6e but breaks the 2e-5
    # parity check, so it is not the default here.
    return (w1f, w2f, packed)


# ---------------------------------------------------------------------------
# Wrapper
# ---------------------------------------------------------------------------
def mlp_forward(x, kernel_params, tile_b=2048):
    w1f, w2f, packed = kernel_params
    B, D = x.shape

    tile_b = min(tile_b, B)
    # v7x: if the whole (large) batch fits in one tile, split it in two
    # lane-multiple tiles so the "parallel" grid axis shards across both TCs.
    if tile_b == B and B >= 256 and (B // 2) % 128 == 0:
        tile_b = B // 2
    assert B % tile_b == 0, "batch must be divisible by the batch tile"
    assert tile_b == B or tile_b % 128 == 0, \
        "partial batch tiles must be multiples of 128 for lane-dense stores"

    grid = (B // tile_b,)
    const = lambda i: (0, 0)   # weights / packed operand stay VMEM-resident

    out = pl.pallas_call(
        mlp_kernel,
        out_shape=jax.ShapeDtypeStruct((1, B), jnp.float32),  # lane-dense logits
        grid=grid,
        in_specs=[
            pl.BlockSpec((tile_b, D), lambda i: (i, 0)),   # x
            pl.BlockSpec(w1f.shape, const),                # W1 (BN folded)
            pl.BlockSpec(w2f.shape, const),                # W2 (BN folded)
            pl.BlockSpec(packed.shape, const),             # packed biases + head
        ],
        out_specs=pl.BlockSpec((1, tile_b), lambda i: (0, i)),
        compiler_params=pltpu.CompilerParams(
            dimension_semantics=("parallel",)),            # shard tiles on v7x 2xTC
    )(x, w1f, w2f, packed)

    return out.reshape(B, 1)


# ---------------------------------------------------------------------------
# Pure-JAX reference (unfused, original module semantics in eval mode)
# ---------------------------------------------------------------------------
def ref_forward(x, params):
    (w1, b1, bn1, w2, b2, bn2, w3, b3) = params

    def bn_apply(h, bn_p):
        gamma, beta, mean, var = bn_p
        return (h - mean) / jnp.sqrt(var + BN_EPS) * gamma + beta

    h = x @ w1 + b1
    h = bn_apply(h, bn1)
    h = _gelu_exact(h)
    h = h @ w2 + b2
    h = bn_apply(h, bn2)
    h = _gelu_exact(h)
    return h @ w3 + b3


if __name__ == "__main__":
    key = jax.random.PRNGKey(0)
    kx, kp = jax.random.split(key)
    x = jax.random.normal(kx, (BATCH, INPUT_DIM), dtype=jnp.float32)

    params = init_params(kp)
    kernel_params = pack_params(params)

    out = mlp_forward(x, kernel_params)
    out = jax.block_until_ready(out)

    ref = ref_forward(x, params)
    assert out.shape == (BATCH, 1), out.shape
    assert jnp.allclose(out, ref, atol=2e-5, rtol=1e-5), (
        f"max abs err {jnp.max(jnp.abs(out - ref))}")
    print("KERNEL_OK")
</pallas_src>

<mosaic_0001>
module attributes {stable_mosaic.version = 11 : i64} {
  func.func @mlp_kernel(%arg0: i32, %arg1: memref<8x32xf32, #tpu.memory_space<vmem>>, %arg2: memref<32x64xf32, #tpu.memory_space<vmem>>, %arg3: memref<64x32xf32, #tpu.memory_space<vmem>>, %arg4: memref<4x128xf32, #tpu.memory_space<vmem>>, %arg5: memref<1x8xf32, #tpu.memory_space<vmem>>) attributes {dimension_semantics = [#tpu.dimension_semantics<parallel>], iteration_bounds = array<i64: 1>, scalar_prefetch = 0 : i64, scratch_operands = 0 : i64, tpu.core_type = #tpu.core_type<tc>, window_params = [{transform_indices = @transform_0, window_bounds = array<i64: 8, 32>}, {pipeline_mode = #tpu.pipeline_mode<synchronous>, transform_indices = @transform_1, window_bounds = array<i64: 32, 64>}, {pipeline_mode = #tpu.pipeline_mode<synchronous>, transform_indices = @transform_2, window_bounds = array<i64: 64, 32>}, {pipeline_mode = #tpu.pipeline_mode<synchronous>, transform_indices = @transform_3, window_bounds = array<i64: 4, 128>}, {transform_indices = @transform_4, window_bounds = array<i64: 1, 8>}]} {
    %c0 = arith.constant 0 : index
    %c0_0 = arith.constant 0 : index
    %0 = vector.load %arg1[%c0, %c0_0] : memref<8x32xf32, #tpu.memory_space<vmem>>, vector<8x32xf32>
    %c0_1 = arith.constant 0 : index
    %c0_2 = arith.constant 0 : index
    %1 = vector.load %arg4[%c0_1, %c0_2] : memref<4x128xf32, #tpu.memory_space<vmem>>, vector<1x64xf32>
    %c1 = arith.constant 1 : index
    %c0_3 = arith.constant 0 : index
    %2 = vector.load %arg4[%c1, %c0_3] : memref<4x128xf32, #tpu.memory_space<vmem>>, vector<1x32xf32>
    %c2 = arith.constant 2 : index
    %c0_4 = arith.constant 0 : index
    %3 = vector.load %arg4[%c2, %c0_4] : memref<4x128xf32, #tpu.memory_space<vmem>>, vector<1x32xf32>
    %c3 = arith.constant 3 : index
    %c0_5 = arith.constant 0 : index
    %4 = vector.load %arg4[%c3, %c0_5] : memref<4x128xf32, #tpu.memory_space<vmem>>, vector<1x1xf32>
    %c0_6 = arith.constant 0 : index
    %c0_7 = arith.constant 0 : index
    %5 = vector.load %arg2[%c0_6, %c0_7] : memref<32x64xf32, #tpu.memory_space<vmem>>, vector<32x64xf32>
    %cst = arith.constant dense<0.000000e+00> : vector<8x64xf32>
    %6 = tpu.matmul %0, %5, %cst {dimension_numbers = #tpu.dot_dimension_numbers<[1], [0], [0], [1], [0, 0, 1, 1], [], []>} : vector<8x32xf32>, vector<32x64xf32>, vector<8x64xf32> -> vector<8x64xf32>
    %7 = vector.broadcast %1 : vector<1x64xf32> to vector<8x64xf32>
    %8 = arith.addf %6, %7 : vector<8x64xf32>
    %cst_8 = arith.constant 5.000000e-01 : f32
    %9 = vector.broadcast %cst_8 : f32 to vector<8x64xf32>
    %10 = arith.mulf %9, %8 : vector<8x64xf32>
    %cst_9 = arith.constant 0.707106769 : f32
    %11 = vector.broadcast %cst_9 : f32 to vector<8x64xf32>
    %12 = arith.mulf %8, %11 : vector<8x64xf32>
    %13 = math.erf %12 : vector<8x64xf32>
    %cst_10 = arith.constant 1.000000e+00 : f32
    %14 = vector.broadcast %cst_10 : f32 to vector<8x64xf32>
    %15 = arith.addf %14, %13 : vector<8x64xf32>
    %16 = arith.mulf %10, %15 : vector<8x64xf32>
    %c0_11 = arith.constant 0 : index
    %c0_12 = arith.constant 0 : index
    %17 = vector.load %arg3[%c0_11, %c0_12] : memref<64x32xf32, #tpu.memory_space<vmem>>, vector<64x32xf32>
    %cst_13 = arith.constant dense<0.000000e+00> : vector<8x32xf32>
    %18 = tpu.matmul %16, %17, %cst_13 {dimension_numbers = #tpu.dot_dimension_numbers<[1], [0], [0], [1], [0, 0, 1, 1], [], []>} : vector<8x64xf32>, vector<64x32xf32>, vector<8x32xf32> -> vector<8x32xf32>
    %19 = vector.broadcast %2 : vector<1x32xf32> to vector<8x32xf32>
    %20 = arith.addf %18, %19 : vector<8x32xf32>
    %cst_14 = arith.constant 5.000000e-01 : f32
    %21 = vector.broadcast %cst_14 : f32 to vector<8x32xf32>
    %22 = arith.mulf %21, %20 : vector<8x32xf32>
    %cst_15 = arith.constant 0.707106769 : f32
    %23 = vector.broadcast %cst_15 : f32 to vector<8x32xf32>
    %24 = arith.mulf %20, %23 : vector<8x32xf32>
    %25 = math.erf %24 : vector<8x32xf32>
    %cst_16 = arith.constant 1.000000e+00 : f32
    %26 = vector.broadcast %cst_16 : f32 to vector<8x32xf32>
    %27 = arith.addf %26, %25 : vector<8x32xf32>
    %28 = arith.mulf %22, %27 : vector<8x32xf32>
    %cst_17 = arith.constant dense<0.000000e+00> : vector<1x8xf32>
    %29 = tpu.matmul %3, %28, %cst_17 {dimension_numbers = #tpu.dot_dimension_numbers<[1], [1], [0], [0], [0, 0, 1, 0], [], []>} : vector<1x32xf32>, vector<8x32xf32>, vector<1x8xf32> -> vector<1x8xf32>
    %30 = vector.broadcast %4 : vector<1x1xf32> to vector<1x8xf32>
    %31 = arith.addf %29, %30 : vector<1x8xf32>
    %c0_18 = arith.constant 0 : index
    %c0_19 = arith.constant 0 : index
    %32 = vector.load %arg5[%c0_18, %c0_19] : memref<1x8xf32, #tpu.memory_space<vmem>>, vector<1x8xf32>
    tpu.vector_store %arg5[%c0_18, %c0_19], %31 {strides = array<i32>} : memref<1x8xf32, #tpu.memory_space<vmem>>, vector<1x8xf32>,
    return
  }
  func.func @transform_0(%arg0: i32) -> (i32, i32) {
    %c0_i32 = arith.constant 0 : i32
    %c0_i32_0 = arith.constant 0 : i32
    return %arg0, %c0_i32 : i32, i32
  }
  func.func @transform_1(%arg0: i32) -> (i32, i32) {
    %c0_i32 = arith.constant 0 : i32
    %c0_i32_0 = arith.constant 0 : i32
    %c0_i32_1 = arith.constant 0 : i32
    return %c0_i32, %c0_i32_0 : i32, i32
  }
  func.func @transform_2(%arg0: i32) -> (i32, i32) {
    %c0_i32 = arith.constant 0 : i32
    %c0_i32_0 = arith.constant 0 : i32
    %c0_i32_1 = arith.constant 0 : i32
    return %c0_i32, %c0_i32_0 : i32, i32
  }
  func.func @transform_3(%arg0: i32) -> (i32, i32) {
    %c0_i32 = arith.constant 0 : i32
    %c0_i32_0 = arith.constant 0 : i32
    %c0_i32_1 = arith.constant 0 : i32
    return %c0_i32, %c0_i32_0 : i32, i32
  }
  func.func @transform_4(%arg0: i32) -> (i32, i32) {
    %c0_i32 = arith.constant 0 : i32
    %c0_i32_0 = arith.constant 0 : i32
    return %c0_i32, %arg0 : i32, i32
  }
}

</mosaic_0001>

<bundles_post_ra>
// kernel: tpu_custom_call.1
= control target key start
LH: loop header
LB: loop body
LE: loop exit
PB: predicated region body
PF: predicated region fallthrough
CT: control target
= control target key end

     0   :  { %s347_s0 = inlined_call_operand.vmem [shape: f32[8,32], index: 0, kind: input, shape index: {}]   ;;  %s348_s1 = inlined_call_operand.vmem [shape: f32[32,64], index: 1, kind: input, shape index: {}]   ;;  %s349_s2 = inlined_call_operand.vmem [shape: f32[64,32], index: 2, kind: input, shape index: {}]   ;;  %s350_s3 = inlined_call_operand.vmem [shape: f32[4,128], index: 3, kind: input, shape index: {}]   ;;  %s351_s4 = inlined_call_operand.hbm [shape: f32[1,8], index: 4, kind: output, shape index: {}]  }
   0x1   :  { %v26_v0 = vld [vmem:[%s348_s1 + $0x18] sm:$0xff]  ;;  %v25_v1 = vld [vmem:[%s348_s1 + $0x10] sm:$0xff]  ;;  %v24_v2 = vld [vmem:[%s348_s1 + $0x8] sm:$0xff] }
   0x2   :  { %44 = vmatpush.msra.mxu0 %v26_v0 }
   0x3   :  { %9 = vsyncpa [#allocation3], 0  ;;  %v23_v3 = vld [vmem:[%s348_s1] sm:$0xff]  ;;  %vm28_vm0 = vcmask 261120   ;;  %v103_v11 = vld [vmem:[%s349_s2 + $0x38] sm:$0xff]  ;;  %vm105_vm5 = vcmask 523264  }
   0x4   :  { %45 = vmatpush.msra.mxu0 %v25_v1  ;;  %v18_v4 = vld [vmem:[%s347_s0] sm:$0xff]  ;;  %117 = vmatpush.msra.mxu1 %v103_v11  ;;  %v102_v14 = vld [vmem:[%s349_s2 + $0x30] sm:$0xff]  ;;  %v101_v17 = vld [vmem:[%s349_s2 + $0x28] sm:$0xff]  ;;  %s264_s20 = smov [#allocation2]   ;;  %s213_s24 = sshll.u32 %s351_s4, 4  ;;  %vm204_vm10 = vcmask 57344   ;;  %s214_s24 = int_to_ptr.hbm [resolvable:$true] %s213_s24 }
   0x5   :  { %v231_v5 = vld [vmem:[%s350_s3] ss:$0 sm:$0xff]  ;;  %v99_v21 = vld [vmem:[%s349_s2 + $0x18] sm:$0xff]  ;;  %v98_v23 = vld [vmem:[%s349_s2 + $0x10] sm:$0xff]  ;;  %s211_s21 = sshll.u32 %s264_s20, 4  ;;  %s212_s21 = int_to_ptr.vmem [resolvable:$true] %s211_s21 }
   0x6   :  { %46 = vmatpush.msra.mxu0 %v24_v2  ;;  %118 = vmatpush.msra.mxu1 %v102_v14  ;;  %v100_v20 = vld [vmem:[%s349_s2 + $0x20] sm:$0xff]  ;;  %v97_v26 = vld [vmem:[%s349_s2 + $0x8] sm:$0xff] }
   0x7   :  { %v96_v28 = vld [vmem:[%s349_s2] sm:$0xff] }
   0x8   :  { %47 = vmatpush.msra.mxu0 %v23_v3  ;;  %119 = vmatpush.msra.mxu1 %v101_v17  ;;  %v232_v55 = vld [vmem:[%s350_s3 + $0x1] ss:$0 sm:$0xff] }
   0x9   :  { %222 = vmatmul.msk.f32.vlgmr.msra.gmra.mxu0 %vm28_vm0, %v18_v4 }
   0xa   :  { %120 = vmatpush.msra.mxu1 %v100_v20 }
   0xc   :  { %121 = vmatpush.msra.mxu1 %v99_v21 }
   0xe   :  { %122 = vmatpush.msra.mxu1 %v98_v23 }
  0x10   :  { %123 = vmatpush.msra.mxu1 %v97_v26 }
  0x12   :  { %124 = vmatpush.msra.mxu1 %v96_v28 }
  0x86   :  { %v49_v6 = vpop.f32.mrf.mxu0 }
  0x87   :  { %v50_v7 = vadd.f32 %v231_v5, %v49_v6 }
  0x89   :  { %v53_v8 = vmul.f32 0.70710677, %v50_v7  ;;  %v52_v52 = vmul.f32 0.5, %v50_v7 }
  0x8b   :  { %v54_v9 = vmul.f32 %v53_v8, %v53_v8 }
  0x8d   :  { %v55_v10 = vmin.f32 %v54_v9, 16.0 }
  0x8f   :  { %v56_v12 = vmul.f32 2.1237322e-06, %v55_v10  ;;  %v67_v13 = vmul.f32 3.8918573e-05, %v55_v10 }
  0x91   :  { %v57_v15 = vadd.f32 0.00028619796, %v56_v12  ;;  %v68_v16 = vadd.f32 0.001143296, %v67_v13  ;;  %v22_v12 = vld [vmem:[%s350_s3 + $0x3] sm:$0x1] }
  0x92   :  { %v263_v13 = vmov 0  }
  0x93   :  { %v58_v18 = vmul.f32 %v57_v15, %v55_v10  ;;  %v69_v19 = vmul.f32 %v68_v16, %v55_v10  ;;  %230 = vset.pattern.permute.xlu0 %v263_v13 }
  0x94   :  { %175 = vperm.xlu0 %230, %v22_v12  }
  0x95   :  { %v70_v22 = vadd.f32 0.014752088, %v69_v19  ;;  %v59_v24 = vadd.f32 0.0036580483, %v58_v18 }
  0x97   :  { %v71_v25 = vmul.f32 %v70_v22, %v55_v10  ;;  %v60_v29 = vmul.f32 %v59_v24, %v55_v10 }
  0x99   :  { %v72_v27 = vadd.f32 0.112945676, %v71_v25  ;;  %v61_v32 = vadd.f32 0.05243302, %v60_v29 }
  0x9b   :  { %v73_v30 = vmul.f32 %v72_v27, %v55_v10  ;;  %v62_v35 = vmul.f32 %v61_v32, %v55_v10 }
  0x9d   :  { %v74_v31 = vadd.f32 0.4994258, %v73_v30  ;;  %v63_v36 = vadd.f32 0.18741608, %v62_v35  ;;  %v21_v35 = vld [vmem:[%s350_s3 + $0x2] sm:$0x1] }
  0x9f   :  { %v75_v33 = vmul.f32 %v74_v31, %v55_v10  ;;  %v64_v38 = vmul.f32 %v63_v36, %v55_v10 }
  0xa1   :  { %v76_v34 = vadd.f32 1.0, %v75_v33  ;;  %v65_v42 = vadd.f32 1.1283791, %v64_v38 }
  0xa3   :  { %233 = vrcp.f32 %v76_v34  ;;  %v88_v41 = vand.u32 2147483648, %v76_v34  ;;  %v86_v44 = vand.u32 2147483647, %v76_v34  ;;  %vm82_vm2 = vweird.f32 %v76_v34 }
  0xa4   :  { %v66_v47 = vmul.f32 %v65_v42, %v53_v8 }
  0xa5   :  { %v89_v46 = vor.u32 1.1754944e-38, %v88_v41  ;;  %vm87_vm4 = vcmp.eq.f32.partialorder %v86_v44, 8.507059e+37 }
  0xa9   :  { %v234_v37 = vpop.eup %233 }
  0xaa   :  { %v78_v39 = vmul.f32 %v234_v37, %v76_v34  ;;  %vm83_vm1 = vweird.f32 %v234_v37 }
  0xab   :  { %vm84_vm3 = vmor %vm82_vm2, %vm83_vm1 }
  0xac   :  { %v79_v40 = vsub.f32 1.0, %v78_v39 }
  0xae   :  { %v80_v43 = vmul.f32 %v234_v37, %v79_v40 }
  0xb0   :  { %v81_v45 = vadd.f32 %v234_v37, %v80_v43 }
  0xb2   :  { %v85_v48 = vsel %vm84_vm3, %v234_v37, %v81_v45 }
  0xb3   :  { %v90_v49 = vsel %vm87_vm4, %v89_v46, %v85_v48 }
  0xb4   :  { %v91_v50 = vmul.f32 %v90_v49, %v66_v47 }
  0xb6   :  { %v223_v51 = vclamps-f32 %v91_v50, 1.0 }
  0xb8   :  { %v94_v53 = vadd.f32 1.0, %v223_v51 }
  0xba   :  { %v95_v54 = vmul.f32 %v94_v53, %v52_v52 }
  0xbc   :  { %224 = vmatmul.msk.f32.vlgmr.msra.gmra.mxu1 %vm105_vm5, %v95_v54 }
 0x106   :  { %v176_v36 = vpop.permute.xlu0 %175 }
 0x139   :  { %v126_v56 = vpop.f32.mrf.mxu1 }
 0x13a   :  { %v127_v57 = vadd.f32 %v232_v55, %v126_v56 }
 0x13c   :  { %v130_v58 = vmul.f32 0.70710677, %v127_v57  ;;  %v129_v32 = vmul.f32 0.5, %v127_v57 }
 0x13e   :  { %v131_v59 = vmul.f32 %v130_v58, %v130_v58 }
 0x140   :  { %v132_v60 = vmin.f32 %v131_v59, 16.0 }
 0x142   :  { %v133_v61 = vmul.f32 2.1237322e-06, %v132_v60  ;;  %v144_v62 = vmul.f32 3.8918573e-05, %v132_v60 }
 0x144   :  { %v134_v63 = vadd.f32 0.00028619796, %v133_v61  ;;  %v145_v0 = vadd.f32 0.001143296, %v144_v62 }
 0x146   :  { %v135_v1 = vmul.f32 %v134_v63, %v132_v60  ;;  %v146_v2 = vmul.f32 %v145_v0, %v132_v60 }
 0x148   :  { %v147_v3 = vadd.f32 0.014752088, %v146_v2  ;;  %v136_v4 = vadd.f32 0.0036580483, %v135_v1 }
 0x14a   :  { %v148_v5 = vmul.f32 %v147_v3, %v132_v60  ;;  %v137_v7 = vmul.f32 %v136_v4, %v132_v60 }
 0x14c   :  { %v149_v6 = vadd.f32 0.112945676, %v148_v5  ;;  %v138_v10 = vadd.f32 0.05243302, %v137_v7 }
 0x14e   :  { %v150_v8 = vmul.f32 %v149_v6, %v132_v60  ;;  %v139_v15 = vmul.f32 %v138_v10, %v132_v60 }
 0x150   :  { %v151_v9 = vadd.f32 0.4994258, %v150_v8  ;;  %v140_v16 = vadd.f32 0.18741608, %v139_v15 }
 0x152   :  { %v152_v11 = vmul.f32 %v151_v9, %v132_v60  ;;  %v141_v18 = vmul.f32 %v140_v16, %v132_v60 }
 0x154   :  { %v153_v14 = vadd.f32 1.0, %v152_v11  ;;  %v142_v22 = vadd.f32 1.1283791, %v141_v18 }
 0x156   :  { %235 = vrcp.f32 %v153_v14  ;;  %v165_v21 = vand.u32 2147483648, %v153_v14  ;;  %v163_v24 = vand.u32 2147483647, %v153_v14  ;;  %vm159_vm7 = vweird.f32 %v153_v14 }
 0x157   :  { %v143_v27 = vmul.f32 %v142_v22, %v130_v58 }
 0x158   :  { %v166_v26 = vor.u32 1.1754944e-38, %v165_v21  ;;  %vm164_vm9 = vcmp.eq.f32.partialorder %v163_v24, 8.507059e+37 }
 0x15c   :  { %v236_v17 = vpop.eup %235 }
 0x15d   :  { %v155_v19 = vmul.f32 %v236_v17, %v153_v14  ;;  %vm160_vm6 = vweird.f32 %v236_v17 }
 0x15e   :  { %vm161_vm8 = vmor %vm159_vm7, %vm160_vm6 }
 0x15f   :  { %v156_v20 = vsub.f32 1.0, %v155_v19 }
 0x161   :  { %v157_v23 = vmul.f32 %v236_v17, %v156_v20 }
 0x163   :  { %v158_v25 = vadd.f32 %v236_v17, %v157_v23 }
 0x165   :  { %v162_v28 = vsel %vm161_vm8, %v236_v17, %v158_v25 }
 0x166   :  { %v167_v29 = vsel %vm164_vm9, %v166_v26, %v162_v28 }
 0x167   :  { %v168_v30 = vmul.f32 %v167_v29, %v143_v27 }
 0x169   :  { %v225_v31 = vclamps-f32 %v168_v30, 1.0 }
 0x16b   :  { %v171_v33 = vadd.f32 1.0, %v225_v31 }
 0x16d   :  { %v172_v34 = vmul.f32 %v171_v33, %v129_v32 }
 0x16f   :  { %226 = vmatpush.xpose.msk.msra.mxu2 %vm28_vm0, %v172_v34 }
 0x172   :  { %227 = vmatmul.msk.f32.vlgmr.msra.gmra.mxu2 %vm28_vm0, %v21_v35 }
 0x1f5   :  { %v201_v37 = vpop.f32.mrf.mxu2 }
 0x1f6   :  { %v202_v38 = vadd.f32 %v201_v37, %v176_v36 }
 0x1f8   :  { %205 = vst.msk [vmem:[#allocation2] sm:$0x1] %vm204_vm10, %v202_v38 }
 0x1f9   :  { %216 = dma.vmem_to_hbm [thread:$0]  %s212_s21, 16, %s214_s24, [#allocation3]  }
 0x1fa   :  { %261 = dma.done.wait [#allocation3], 16  }
 0x1fb   :  { %262 = vsyncadd [#allocation3], 4294967280 }
 0x1fc   :  { %221 = vsyncpa [#allocation3], 1 }

</bundles_post_ra>
